<compile_context>
chip_gen: v5e
topology: v5e:2x2
jax: 0.10.0
libtpu: 0.0.40
codegen_flags: <defaults>
</compile_context>

<pallas_src>
import math

import jax
import jax.numpy as jnp
from jax.experimental import pallas as pl
from jax.experimental.pallas import tpu as pltpu


def _pair_swap_kernel(x_ref, o_ref):
    # Even/odd lane swizzle: out[2k] = in[2k+1], out[2k+1] = in[2k].
    # Rolls run on the XLU and the select on the VALU -- both idle in a copy
    # kernel -- keeping the body at the HBM roofline on every generation and
    # leaving v5e's single vst slot free for the store.
    x = x_ref[...]
    cols = x.shape[-1]
    fwd = pltpu.roll(x, shift=cols - 1, axis=1)   # out[i] = in[(i + 1) % cols]
    bwd = pltpu.roll(x, shift=1, axis=1)          # out[i] = in[(i - 1) % cols]
    lane = jax.lax.broadcasted_iota(jnp.int32, x.shape, 1)
    o_ref[...] = jnp.where(lane % 2 == 0, fwd, bwd)


def _pair_swap_last_axis(x2):
    """Swap the two entries of the (size-2) last axis, on the native layout."""
    shape = x2.shape
    dtype = x2.dtype
    total = math.prod(shape)
    itemsize = jnp.dtype(dtype).itemsize

    # Lane-dense factorization of the flat, row-major view: cols must be a
    # multiple of 128 (unmasked full-lane vld/vst) and even, so no last-axis
    # pair ever straddles a row boundary.
    cols = next((c for c in (4096, 2048, 1024, 512, 256, 128) if total % c == 0),
                None)
    if cols is None:
        # TODO(synk): flat size not a multiple of 128 (degenerate shape); a pad
        # path would add extra HBM passes, so fall back to the pure-JAX reverse.
        return x2[..., ::-1]
    rows = total // cols

    # Row-tile: target ~4 MiB per block.  This amortizes the ~0.35us/step
    # pipeline overhead exposed by v7x's 3.2 TB/s HBM, while double-buffered
    # in+out (~16 MiB) stays comfortably inside v7x's 64 MiB VMEM (and trivially
    # inside v5e/v6e's 128 MiB).
    target_block_bytes = 4 * 1024 * 1024
    tm_cap = max(8, (target_block_bytes // (cols * itemsize)) // 8 * 8)
    tm = rows if rows <= tm_cap else tm_cap

    flat = x2.reshape(rows, cols)   # free reshape: preserves native memory order
    out = pl.pallas_call(
        _pair_swap_kernel,
        out_shape=jax.ShapeDtypeStruct((rows, cols), dtype),
        grid=(pl.cdiv(rows, tm),),
        in_specs=[pl.BlockSpec((tm, cols), lambda i: (i, 0))],
        out_specs=pl.BlockSpec((tm, cols), lambda i: (i, 0)),
        compiler_params=pltpu.CompilerParams(
            dimension_semantics=("parallel",),        # row tiles shard across v7x's 2 TCs
            vmem_limit_bytes=48 * 1024 * 1024),
        cost_estimate=pl.CostEstimate(flops=0, transcendentals=0,
                                      bytes_accessed=2 * total * itemsize),
    )(flat)
    return out.reshape(shape)


def shuffle_sample_forward(x, key, training=True):
    """JAX/Pallas equivalent of shuffle_sample.forward."""
    if not training:
        return x   # eval mode: exact identity, no kernel, no extra HBM traffic.

    s = x.shape[-2]
    assert s == 2, "shuffle_sample requires x.shape[-2] == 2"
    assert x.shape[-1] >= s, "last axis needs >= 2 entries to gather from"

    # torch.randperm(2) -> permutation of [0, 1]; it is either identity or swap.
    index = jax.random.permutation(key, s).astype(jnp.int32)
    swap = index[0] != 0

    # Gather of columns {0, 1} along the last axis: output shape is
    # x.shape[:-1] + (2,) (== x.shape only when x.shape[-1] == 2, the usual
    # RAVEN input), matching the PyTorch advanced-indexing semantics.
    x2 = x if x.shape[-1] == 2 else x[..., :2]

    # Identity permutations (~50% of training calls) skip the kernel entirely.
    return jax.lax.cond(swap, lambda: _pair_swap_last_axis(x2), lambda: x2)


if __name__ == "__main__":
    key = jax.random.PRNGKey(0)
    kx, kx2, kperm = jax.random.split(key, 3)

    # Small 5-D inputs consistent with the module: (..., 2, 2), shape[-2] == 2.
    x = jax.random.normal(kx, (2, 4, 16, 2, 2), dtype=jnp.float32)      # rows=1, cols=512
    x_alt = jax.random.normal(kx2, (2, 9, 16, 2, 2), dtype=jnp.float32)  # rows=9, cols=128

    # 1) Direct swap-kernel checks (guarantee the Pallas path runs and is exact).
    for arr in (x, x_alt):
        y_swap = jax.block_until_ready(_pair_swap_last_axis(arr))
        assert y_swap.shape == arr.shape and y_swap.dtype == arr.dtype
        assert bool(jnp.all(y_swap == arr[..., ::-1]))

    # 2) Full training forward vs pure-JAX reference for several keys, so both
    #    the identity and the swap permutation get exercised.
    for i in range(6):
        k = jax.random.fold_in(kperm, i)
        y = jax.block_until_ready(shuffle_sample_forward(x, k, training=True))
        idx = jax.random.permutation(k, 2).astype(jnp.int32)
        expected = jnp.take(x, idx, axis=-1)
        assert y.shape == expected.shape and y.dtype == x.dtype
        assert bool(jnp.all(y == expected))

    # 3) Eval path: exact identity, no kernel launch.
    y_eval = jax.block_until_ready(shuffle_sample_forward(x, kperm, training=False))
    assert bool(jnp.all(y_eval == x))

    print("KERNEL_OK")
</pallas_src>

<mosaic_0001>
module attributes {stable_mosaic.version = 11 : i64} {
  func.func @_pair_swap_kernel(%arg0: i32, %arg1: memref<1x512xf32, #tpu.memory_space<vmem>>, %arg2: memref<1x512xf32, #tpu.memory_space<vmem>>) attributes {dimension_semantics = [#tpu.dimension_semantics<parallel>], iteration_bounds = array<i64: 1>, scalar_prefetch = 0 : i64, scratch_operands = 0 : i64, tpu.core_type = #tpu.core_type<tc>, window_params = [{transform_indices = @transform_0, window_bounds = array<i64: 1, 512>}, {transform_indices = @transform_1, window_bounds = array<i64: 1, 512>}]} {
    %c0 = arith.constant 0 : index
    %c0_0 = arith.constant 0 : index
    %0 = vector.load %arg1[%c0, %c0_0] : memref<1x512xf32, #tpu.memory_space<vmem>>, vector<1x512xf32>
    %c511_i32 = arith.constant 511 : i32
    %1 = tpu.dynamic_rotate %0 by %c511_i32 dim 1 : vector<1x512xf32>, i32 -> vector<1x512xf32>
    %c1_i32 = arith.constant 1 : i32
    %2 = tpu.dynamic_rotate %0 by %c1_i32 dim 1 : vector<1x512xf32>, i32 -> vector<1x512xf32>
    %3 = tpu.iota {dimensions = array<i32: 1>} : vector<1x512xi32>
    %c2_i32 = arith.constant 2 : i32
    %c0_i32 = arith.constant 0 : i32
    %4 = arith.cmpi eq, %c2_i32, %c0_i32 : i32
    %c1_i32_1 = arith.constant 1 : i32
    %5 = arith.select %4, %c1_i32_1, %c2_i32 : i32
    %6 = vector.broadcast %5 : i32 to vector<1x512xi32>
    %7 = arith.remsi %3, %6 : vector<1x512xi32>
    %c0_i32_2 = arith.constant 0 : i32
    %8 = vector.broadcast %c0_i32_2 : i32 to vector<1x512xi32>
    %9 = arith.cmpi ne, %7, %8 : vector<1x512xi32>
    %c0_i32_3 = arith.constant 0 : i32
    %10 = vector.broadcast %c0_i32_3 : i32 to vector<1x512xi32>
    %11 = arith.cmpi slt, %7, %10 : vector<1x512xi32>
    %c0_i32_4 = arith.constant 0 : i32
    %12 = arith.cmpi slt, %5, %c0_i32_4 : i32
    %13 = vector.broadcast %12 : i1 to vector<1x512xi1>
    %14 = vector.broadcast %13 : vector<1x512xi1> to vector<1x512xi1>
    %15 = arith.xori %11, %14 : vector<1x512xi1>
    %16 = arith.andi %15, %9 : vector<1x512xi1>
    %17 = vector.broadcast %5 : i32 to vector<1x512xi32>
    %18 = arith.addi %7, %17 : vector<1x512xi32>
    %19 = arith.select %16, %18, %7 : vector<1x512xi1>, vector<1x512xi32>
    %c0_i32_5 = arith.constant 0 : i32
    %20 = vector.broadcast %c0_i32_5 : i32 to vector<1x512xi32>
    %21 = arith.cmpi eq, %19, %20 : vector<1x512xi32>
    %22 = arith.select %21, %1, %2 : vector<1x512xi1>, vector<1x512xf32>
    %c0_6 = arith.constant 0 : index
    %c0_7 = arith.constant 0 : index
    %23 = vector.load %arg2[%c0_6, %c0_7] : memref<1x512xf32, #tpu.memory_space<vmem>>, vector<1x512xf32>
    tpu.vector_store %arg2[%c0_6, %c0_7], %22 {strides = array<i32>} : memref<1x512xf32, #tpu.memory_space<vmem>>, vector<1x512xf32>,
    return
  }
  func.func @transform_0(%arg0: i32) -> (i32, i32) {
    %c0_i32 = arith.constant 0 : i32
    %c0_i32_0 = arith.constant 0 : i32
    return %arg0, %c0_i32 : i32, i32
  }
  func.func @transform_1(%arg0: i32) -> (i32, i32) {
    %c0_i32 = arith.constant 0 : i32
    %c0_i32_0 = arith.constant 0 : i32
    return %arg0, %c0_i32 : i32, i32
  }
}

</mosaic_0001>

<bundles_post_ra>
// kernel: tpu_custom_call.1
= control target key start
LH: loop header
LB: loop body
LE: loop exit
PB: predicated region body
PF: predicated region fallthrough
CT: control target
= control target key end

     0   :  { %6 = vsyncpa [#allocation3], 0  ;;  %s265_s0 = inlined_call_operand.hbm [shape: f32[1,512], index: 0, kind: input, shape index: {}]   ;;  %s266_s1 = inlined_call_operand.hbm [shape: f32[1,512], index: 1, kind: output, shape index: {}]  }
   0x1   :  { %7 = vsyncpa [#allocation4], 0  ;;  %s13_s8 = sshll.u32 %s265_s0, 4  ;;  %s212_s9 = smov [#allocation2]   ;;  %s14_s8 = int_to_ptr.hbm [resolvable:$true] %s13_s8 }
   0x2   :  { %s15_s10 = sshll.u32 %s212_s9, 4  ;;  %s16_s10 = int_to_ptr.vmem [resolvable:$true] %s15_s10 }
   0x3   :  { %18 = dma.hbm_to_vmem [thread:$0]  %s14_s8, 64, %s16_s10, [#allocation3]  }
   0x4   :  { %208 = dma.done.wait [#allocation3], 64  }
   0x5   :  { %209 = vsyncadd [#allocation3], 4294967232  ;;  %v23_v0 = vld [vmem:[#allocation2] sm:$0xf]  ;;  %s213_s11 = smov 127   ;;  %s214_s12 = smov 1   ;;  %v41_v5 = vlaneseq }
   0x6   :  { %v27_v1 = vperm.slane %v23_v0, 2  ;;  %v25_v2 = vperm.slane %v23_v0, 0  ;;  %v28_v3 = vperm.slane %v23_v0, 3  ;;  %v26_v4 = vperm.slane %v23_v0, 1  ;;  %s215_s0 = smov [#allocation5]   ;;  %s146_s16 = sshll.u32 %s266_s1, 4  ;;  %s147_s16 = int_to_ptr.hbm [resolvable:$true] %s146_s16 }
   0x7   :  { %v42_v9 = vand.u32 127, %v41_v5  ;;  %vm127_vm6 = vcmask 1040384   ;;  %vm129_vm7 = vcmask 1042434   ;;  %s144_s13 = sshll.u32 %s215_s0, 4  ;;  %vm131_vm8 = vcmask 1041408   ;;  %s145_s13 = int_to_ptr.vmem [resolvable:$true] %s144_s13 }
   0x8   :  { %37 = vrot.lane.b32.xlu1 %v27_v1, %s213_s11  ;;  %33 = vrot.lane.b32.xlu0 %v25_v2, %s213_s11  ;;  %vm136_vm9 = vcmp.lt.s32.totalorder %v41_v5, 512 }
   0x9   :  { %48 = vrot.lane.b32.xlu2 %v25_v2, %s214_s12  ;;  %v61_v10 = vadd.s32 128, %v42_v9  ;;  %v62_v11 = vadd.s32 256, %v42_v9  ;;  %v63_v12 = vadd.s32 384, %v42_v9  ;;  %vm43_vm0 = vcmp.lt.s32.totalorder %v42_v9, 127 }
   0xa   :  { %vm56_vm1 = vcmp.lt.s32.totalorder %v42_v9, 1  ;;  %v68_v17 = vand.u32 1, %v42_v9 }
   0xb   :  { %v75_v15 = vand.u32 1, %v61_v10  ;;  %v82_v18 = vand.u32 1, %v62_v11  ;;  %v89_v19 = vand.u32 1, %v63_v12 }
   0xc   :  { %vm235_vm3 = vcmp.eq.s32.totalorder %v68_v17, 0 }
   0xd   :  { %vm230_vm2 = vcmp.eq.s32.totalorder %v75_v15, 0  ;;  %vm239_vm4 = vcmp.eq.s32.totalorder %v82_v18, 0  ;;  %vm243_vm5 = vcmp.eq.s32.totalorder %v89_v19, 0 }
  0x10   :  { %39 = vrot.lane.b32.xlu1 %v28_v3, %s213_s11  ;;  %35 = vrot.lane.b32.xlu0 %v26_v4, %s213_s11 }
  0x11   :  { %50 = vrot.lane.b32.xlu2 %v26_v4, %s214_s12 }
  0x18   :  { %54 = vrot.lane.b32.xlu1 %v28_v3, %s214_s12  ;;  %52 = vrot.lane.b32.xlu0 %v27_v1, %s214_s12 }
  0x63   :  { %v49_v6 = vpop.permute.xlu2 %48 }
  0x6b   :  { %v51_v16 = vpop.permute.xlu2 %50 }
  0x6c   :  { %v59_v20 = vsel %vm56_vm1, %v49_v6, %v51_v16 }
  0x7a   :  { %v38_v7 = vpop.permute.xlu1 %37  ;;  %v34_v8 = vpop.permute.xlu0 %33 }
  0x82   :  { %v40_v13 = vpop.permute.xlu1 %39  ;;  %v36_v14 = vpop.permute.xlu0 %35 }
  0x83   :  { %v45_v22 = vsel %vm43_vm0, %v36_v14, %v38_v7  ;;  %v44_v26 = vsel %vm43_vm0, %v38_v7, %v40_v13  ;;  %v47_v27 = vsel %vm43_vm0, %v40_v13, %v34_v8  ;;  %v46_v31 = vsel %vm43_vm0, %v34_v8, %v36_v14 }
  0x84   :  { %v117_v28 = vsel %vm230_vm2, %v45_v22, %v59_v20 }
  0x85   :  { %v124_v38 = vrot.slane %v117_v28, 7 }
  0x8a   :  { %v55_v29 = vpop.permute.xlu1 %54  ;;  %v53_v30 = vpop.permute.xlu0 %52 }
  0x8b   :  { %v60_v32 = vsel %vm56_vm1, %v55_v29, %v49_v6  ;;  %v57_v33 = vsel %vm56_vm1, %v53_v30, %v55_v29  ;;  %v58_v34 = vsel %vm56_vm1, %v51_v16, %v53_v30 }
  0x8c   :  { %v116_v35 = vsel %vm235_vm3, %v46_v31, %v60_v32  ;;  %v118_v36 = vsel %vm239_vm4, %v44_v26, %v58_v34  ;;  %v119_v37 = vsel %vm243_vm5, %v47_v27, %v57_v33 }
  0x8d   :  { %v125_v39 = vrot.slane %v118_v36, 6  ;;  %v126_v40 = vrot.slane %v119_v37, 5  ;;  %v128_v41 = vsel %vm127_vm6, %v116_v35, %v124_v38 }
  0x8f   :  { %v130_v42 = vsel %vm129_vm7, %v125_v39, %v126_v40 }
  0x90   :  { %v132_v43 = vsel %vm131_vm8, %v128_v41, %v130_v42 }
  0x91   :  { %138 = vst.msk [vmem:[#allocation5] sm:$0xf] %vm136_vm9, %v132_v43 }
  0x92   :  { %149 = dma.vmem_to_hbm [thread:$0]  %s145_s13, 64, %s147_s16, [#allocation4]  }
  0x93   :  { %210 = dma.done.wait [#allocation4], 64  }
  0x94   :  { %211 = vsyncadd [#allocation4], 4294967232 }
  0x95   :  { %154 = vsyncpa [#allocation3], 1 }
  0x96   :  { %155 = vsyncpa [#allocation4], 1 }

</bundles_post_ra>
